<compile_context>
chip_gen: v6e
topology: v6e:2x2x1
jax: 0.10.0
libtpu: 0.0.40
codegen_flags: <defaults>
</compile_context>

<pallas_src>
import functools

import jax
import jax.numpy as jnp
from jax.experimental import pallas as pl
from jax.experimental.pallas import tpu as pltpu


def _round_up(x, m):
    return (x + m - 1) // m * m


# ---------------------------------------------------------------------------
# Kernels
# ---------------------------------------------------------------------------
def _stats_kernel(p_ref, w_ref, gamma_ref, beta_ref,      # inputs
                  scale_ref, shift_ref,                    # outputs (1, Cpad)
                  sum_ref, sumsq_ref,                      # VMEM scratch (1, Cpad)
                  *, inv_m, eps):
    """Phase 1: conv matmul per tile + global per-channel sum / sumsq accumulation.

    On the last tile, folds gamma/beta/eps into a fused (scale, shift)."""
    i = pl.program_id(0)

    @pl.when(i == 0)
    def _():
        sum_ref[...] = jnp.zeros_like(sum_ref)
        sumsq_ref[...] = jnp.zeros_like(sumsq_ref)

    # Conv tile on the MXU: bf16 operands, f32 accumulation.
    y = jnp.dot(p_ref[...], w_ref[...], preferred_element_type=jnp.float32)  # (TM, Cpad)
    sum_ref[...] += jnp.sum(y, axis=0, keepdims=True)
    sumsq_ref[...] += jnp.sum(y * y, axis=0, keepdims=True)

    @pl.when(i == pl.num_programs(0) - 1)
    def _():
        mean = sum_ref[...] * inv_m
        var = sumsq_ref[...] * inv_m - mean * mean
        var = jnp.maximum(var, 0.0)                      # guard cancellation negatives
        scale = gamma_ref[...] * jax.lax.rsqrt(var + eps)
        scale_ref[...] = scale
        shift_ref[...] = beta_ref[...] - mean * scale


def _apply_kernel(p_ref, w_ref, scale_ref, shift_ref, o_ref, *, activation):
    """Phase 2: recompute conv tile, apply fused BN scale/shift (+ ReLU), store."""
    y = jnp.dot(p_ref[...], w_ref[...], preferred_element_type=jnp.float32)  # (TM, Cpad) f32
    out = y * scale_ref[...] + shift_ref[...]            # single FMA pass (BN fused)
    if activation:
        out = jnp.maximum(out, 0.0)
    o_ref[...] = out.astype(o_ref.dtype)


# ---------------------------------------------------------------------------
# Wrapper
# ---------------------------------------------------------------------------
def _im2col_nhwc(x_nhwc, kh, kw, stride, padding):
    """x_nhwc: (N, H, W, Cin) -> patches (N*OH*OW, KH*KW*Cin), feature order (kh, kw, cin)."""
    n, h, w, c = x_nhwc.shape
    sh, sw = stride
    ph, pw = padding
    oh = (h + 2 * ph - kh) // sh + 1
    ow = (w + 2 * pw - kw) // sw + 1
    xp = jnp.pad(x_nhwc, ((0, 0), (ph, ph), (pw, pw), (0, 0)))
    cols = []
    for i in range(kh):
        for j in range(kw):
            cols.append(xp[:, i:i + sh * oh:sh, j:j + sw * ow:sw, :])   # (N, OH, OW, C)
    p = jnp.stack(cols, axis=3)                    # (N, OH, OW, KH*KW, C)
    p = p.reshape(n * oh * ow, kh * kw * c)
    return p, oh, ow


def conv_block_forward(x, weight, bias, gamma, beta, *,
                       stride=(1, 1), padding=(1, 1), eps=1e-5, activation=True,
                       block_m=512):
    """Forward of Conv_block. x: (N, Cin, H, W) f32. Returns (N, Cout, OH, OW) f32."""
    # Train-mode BN subtracts the per-channel batch mean, which cancels the conv bias
    # exactly, so it is not applied in the kernel.
    del bias
    n = x.shape[0]
    cout, cin, kh, kw = weight.shape

    x_nhwc = jnp.transpose(x, (0, 2, 3, 1))
    patches, oh, ow = _im2col_nhwc(x_nhwc, kh, kw, stride, padding)   # (M, K) f32
    m, k = patches.shape

    # Lane-dense padding: K and Cout up to 128 lanes, M up to a multiple of the tile.
    k_pad = _round_up(k, 128)
    c_pad = _round_up(cout, 128)
    block_m = max(8, _round_up(min(block_m, m), 8))
    m_pad = _round_up(m, block_m)
    num_tiles = m_pad // block_m

    # bf16 matmul operands (f32 MXU accumulation); zero-padded rows/cols don't affect
    # the dot product, and padded M rows contribute 0 to the stats (we divide by true M).
    patches_p = jnp.pad(patches, ((0, m_pad - m), (0, k_pad - k))).astype(jnp.bfloat16)
    w2d = jnp.transpose(weight, (2, 3, 1, 0)).reshape(kh * kw * cin, cout)  # (K, Cout), (kh,kw,cin)
    w_p = jnp.pad(w2d, ((0, k_pad - k), (0, c_pad - cout))).astype(jnp.bfloat16)
    g_p = jnp.pad(gamma.reshape(1, cout).astype(jnp.float32), ((0, 0), (0, c_pad - cout)))
    b_p = jnp.pad(beta.reshape(1, cout).astype(jnp.float32), ((0, 0), (0, c_pad - cout)))

    vmem_limit = 32 * 1024 * 1024          # safe on v5e/v6e (128 MiB) and v7x (64 MiB)
    flops_mm = 2 * m_pad * k_pad * c_pad

    # ---------------- Phase 1: global BN statistics -> fused (scale, shift) -------------
    stats_kernel = functools.partial(_stats_kernel, inv_m=1.0 / float(m), eps=float(eps))
    scale, shift = pl.pallas_call(
        stats_kernel,
        out_shape=(jax.ShapeDtypeStruct((1, c_pad), jnp.float32),
                   jax.ShapeDtypeStruct((1, c_pad), jnp.float32)),
        grid=(num_tiles,),
        in_specs=[
            pl.BlockSpec((block_m, k_pad), lambda i: (i, 0)),   # patches tile
            pl.BlockSpec((k_pad, c_pad), lambda i: (0, 0)),     # weight (resident)
            pl.BlockSpec((1, c_pad), lambda i: (0, 0)),         # gamma
            pl.BlockSpec((1, c_pad), lambda i: (0, 0)),         # beta
        ],
        out_specs=(pl.BlockSpec((1, c_pad), lambda i: (0, 0)),
                   pl.BlockSpec((1, c_pad), lambda i: (0, 0))),
        scratch_shapes=[pltpu.VMEM((1, c_pad), jnp.float32),    # running sum
                        pltpu.VMEM((1, c_pad), jnp.float32)],   # running sum of squares
        compiler_params=pltpu.CompilerParams(
            dimension_semantics=("arbitrary",),                 # accumulation across tiles
            vmem_limit_bytes=vmem_limit),
        cost_estimate=pl.CostEstimate(
            flops=flops_mm + 4 * m_pad * c_pad,
            transcendentals=c_pad,
            bytes_accessed=m_pad * k_pad * 2 + k_pad * c_pad * 2 + 6 * c_pad * 4),
    )(patches_p, w_p, g_p, b_p)

    # ---------------- Phase 2: apply fused BN (+ ReLU), lane-dense output ---------------
    apply_kernel = functools.partial(_apply_kernel, activation=bool(activation))
    out2d = pl.pallas_call(
        apply_kernel,
        out_shape=jax.ShapeDtypeStruct((m_pad, c_pad), jnp.float32),
        grid=(num_tiles,),
        in_specs=[
            pl.BlockSpec((block_m, k_pad), lambda i: (i, 0)),
            pl.BlockSpec((k_pad, c_pad), lambda i: (0, 0)),
            pl.BlockSpec((1, c_pad), lambda i: (0, 0)),
            pl.BlockSpec((1, c_pad), lambda i: (0, 0)),
        ],
        out_specs=pl.BlockSpec((block_m, c_pad), lambda i: (i, 0)),
        compiler_params=pltpu.CompilerParams(
            dimension_semantics=("parallel",),                  # independent tiles (megacore)
            vmem_limit_bytes=vmem_limit),
        cost_estimate=pl.CostEstimate(
            flops=flops_mm + 3 * m_pad * c_pad,
            transcendentals=0,
            bytes_accessed=(m_pad * k_pad * 2 + k_pad * c_pad * 2
                            + m_pad * c_pad * 4 + 2 * c_pad * 4)),
    )(patches_p, w_p, scale, shift)

    out = out2d[:m, :cout].reshape(n, oh, ow, cout)
    out = jnp.transpose(out, (0, 3, 1, 2))        # back to NCHW (PyTorch convention)
    return out


# ---------------------------------------------------------------------------
# Reference + test
# ---------------------------------------------------------------------------
def _reference(x, weight, bias, gamma, beta, *, stride, padding, eps, activation):
    """Pure-JAX f32 reference (full PyTorch semantics, incl. conv bias)."""
    y = jax.lax.conv_general_dilated(
        x, weight, window_strides=stride,
        padding=[(padding[0], padding[0]), (padding[1], padding[1])],
        dimension_numbers=("NCHW", "OIHW", "NCHW"))
    y = y + bias.reshape(1, -1, 1, 1)
    mean = jnp.mean(y, axis=(0, 2, 3), keepdims=True)
    var = jnp.mean((y - mean) ** 2, axis=(0, 2, 3), keepdims=True)
    y = (y - mean) * jax.lax.rsqrt(var + eps)
    y = gamma.reshape(1, -1, 1, 1) * y + beta.reshape(1, -1, 1, 1)
    if activation:
        y = jnp.maximum(y, 0.0)
    return y


if __name__ == "__main__":
    # Small shapes consistent with the module: NCHW input,
    # Conv2d(in=4, out=8, kernel_size=3, stride=1, padding=1) -> BN -> ReLU.
    N, CIN, H, W = 2, 4, 16, 16
    COUT, KH, KW = 8, 3, 3
    stride, padding = (1, 1), (1, 1)

    key = jax.random.PRNGKey(0)
    kx, kw_, kb = jax.random.split(key, 3)
    x = jax.random.normal(kx, (N, CIN, H, W), dtype=jnp.float32)

    fan_in = CIN * KH * KW
    bound = 1.0 / (fan_in ** 0.5)
    weight = jax.random.uniform(kw_, (COUT, CIN, KH, KW), jnp.float32, -bound, bound)
    bias = jax.random.uniform(kb, (COUT,), jnp.float32, -bound, bound)
    gamma = jnp.ones((COUT,), jnp.float32)    # BatchNorm2d weight init
    beta = jnp.zeros((COUT,), jnp.float32)    # BatchNorm2d bias init

    # block_m=128 so the small test exercises the multi-tile grid (M=512 -> 4 tiles).
    fwd = jax.jit(functools.partial(conv_block_forward,
                                    stride=stride, padding=padding,
                                    eps=1e-5, activation=True, block_m=128))
    out = fwd(x, weight, bias, gamma, beta)
    out = jax.block_until_ready(out)

    ref = _reference(x, weight, bias, gamma, beta,
                     stride=stride, padding=padding, eps=1e-5, activation=True)
    assert out.shape == (N, COUT, H, W)
    # bf16 matmul operands vs f32 reference -> slightly looser tolerance.
    assert jnp.allclose(out, ref, rtol=2e-2, atol=2e-2), \
        f"max abs diff = {jnp.max(jnp.abs(out - ref))}"

    print("KERNEL_OK")
</pallas_src>

<mosaic_0001>
module attributes {stable_mosaic.version = 11 : i64} {
  func.func @_apply_kernel(%arg0: i32, %arg1: memref<128x128xbf16, #tpu.memory_space<vmem>>, %arg2: memref<128x128xbf16, #tpu.memory_space<vmem>>, %arg3: memref<1x128xf32, #tpu.memory_space<vmem>>, %arg4: memref<1x128xf32, #tpu.memory_space<vmem>>, %arg5: memref<128x128xf32, #tpu.memory_space<vmem>>) attributes {dimension_semantics = [#tpu.dimension_semantics<parallel>], iteration_bounds = array<i64: 4>, scalar_prefetch = 0 : i64, scratch_operands = 0 : i64, tpu.core_type = #tpu.core_type<tc>, window_params = [{transform_indices = @transform_0, window_bounds = array<i64: 128, 128>}, {pipeline_mode = #tpu.pipeline_mode<synchronous>, transform_indices = @transform_1, window_bounds = array<i64: 128, 128>}, {pipeline_mode = #tpu.pipeline_mode<synchronous>, transform_indices = @transform_2, window_bounds = array<i64: 1, 128>}, {pipeline_mode = #tpu.pipeline_mode<synchronous>, transform_indices = @transform_3, window_bounds = array<i64: 1, 128>}, {transform_indices = @transform_4, window_bounds = array<i64: 128, 128>}]} {
    %c0 = arith.constant 0 : index
    %c0_0 = arith.constant 0 : index
    %0 = vector.load %arg1[%c0, %c0_0] : memref<128x128xbf16, #tpu.memory_space<vmem>>, vector<128x128xbf16>
    %c0_1 = arith.constant 0 : index
    %c0_2 = arith.constant 0 : index
    %1 = vector.load %arg2[%c0_1, %c0_2] : memref<128x128xbf16, #tpu.memory_space<vmem>>, vector<128x128xbf16>
    %cst = arith.constant dense<0.000000e+00> : vector<128x128xf32>
    %2 = tpu.matmul %0, %1, %cst {dimension_numbers = #tpu.dot_dimension_numbers<[1], [0], [0], [1], [0, 0, 1, 1], [], []>} : vector<128x128xbf16>, vector<128x128xbf16>, vector<128x128xf32> -> vector<128x128xf32>
    %c0_3 = arith.constant 0 : index
    %c0_4 = arith.constant 0 : index
    %3 = vector.load %arg3[%c0_3, %c0_4] : memref<1x128xf32, #tpu.memory_space<vmem>>, vector<1x128xf32>
    %4 = vector.broadcast %3 : vector<1x128xf32> to vector<128x128xf32>
    %5 = arith.mulf %2, %4 : vector<128x128xf32>
    %c0_5 = arith.constant 0 : index
    %c0_6 = arith.constant 0 : index
    %6 = vector.load %arg4[%c0_5, %c0_6] : memref<1x128xf32, #tpu.memory_space<vmem>>, vector<1x128xf32>
    %7 = vector.broadcast %6 : vector<1x128xf32> to vector<128x128xf32>
    %8 = arith.addf %5, %7 : vector<128x128xf32>
    %cst_7 = arith.constant 0.000000e+00 : f32
    %9 = vector.broadcast %cst_7 : f32 to vector<128x128xf32>
    %10 = arith.maximumf %8, %9 : vector<128x128xf32>
    %c0_8 = arith.constant 0 : index
    %c0_9 = arith.constant 0 : index
    %11 = vector.load %arg5[%c0_8, %c0_9] : memref<128x128xf32, #tpu.memory_space<vmem>>, vector<128x128xf32>
    tpu.vector_store %arg5[%c0_8, %c0_9], %10 {strides = array<i32>} : memref<128x128xf32, #tpu.memory_space<vmem>>, vector<128x128xf32>,
    return
  }
  func.func @transform_0(%arg0: i32) -> (i32, i32) {
    %c0_i32 = arith.constant 0 : i32
    %c0_i32_0 = arith.constant 0 : i32
    return %arg0, %c0_i32 : i32, i32
  }
  func.func @transform_1(%arg0: i32) -> (i32, i32) {
    %c0_i32 = arith.constant 0 : i32
    %c0_i32_0 = arith.constant 0 : i32
    %c0_i32_1 = arith.constant 0 : i32
    return %c0_i32, %c0_i32_0 : i32, i32
  }
  func.func @transform_2(%arg0: i32) -> (i32, i32) {
    %c0_i32 = arith.constant 0 : i32
    %c0_i32_0 = arith.constant 0 : i32
    %c0_i32_1 = arith.constant 0 : i32
    return %c0_i32, %c0_i32_0 : i32, i32
  }
  func.func @transform_3(%arg0: i32) -> (i32, i32) {
    %c0_i32 = arith.constant 0 : i32
    %c0_i32_0 = arith.constant 0 : i32
    %c0_i32_1 = arith.constant 0 : i32
    return %c0_i32, %c0_i32_0 : i32, i32
  }
  func.func @transform_4(%arg0: i32) -> (i32, i32) {
    %c0_i32 = arith.constant 0 : i32
    %c0_i32_0 = arith.constant 0 : i32
    return %arg0, %c0_i32 : i32, i32
  }
}

module attributes {stable_mosaic.version = 11 : i64} {
  func.func @_stats_kernel(%arg0: i32, %arg1: memref<128x128xbf16, #tpu.memory_space<vmem>>, %arg2: memref<128x128xbf16, #tpu.memory_space<vmem>>, %arg3: memref<1x128xf32, #tpu.memory_space<vmem>>, %arg4: memref<1x128xf32, #tpu.memory_space<vmem>>, %arg5: memref<1x128xf32, #tpu.memory_space<vmem>>, %arg6: memref<1x128xf32, #tpu.memory_space<vmem>>, %arg7: memref<1x128xf32, #tpu.memory_space<vmem>>, %arg8: memref<1x128xf32, #tpu.memory_space<vmem>>) attributes {dimension_semantics = [#tpu.dimension_semantics<arbitrary>], iteration_bounds = array<i64: 4>, scalar_prefetch = 0 : i64, scratch_operands = 2 : i64, tpu.core_type = #tpu.core_type<tc>, window_params = [{transform_indices = @transform_0, window_bounds = array<i64: 128, 128>}, {pipeline_mode = #tpu.pipeline_mode<synchronous>, transform_indices = @transform_1, window_bounds = array<i64: 128, 128>}, {pipeline_mode = #tpu.pipeline_mode<synchronous>, transform_indices = @transform_2, window_bounds = array<i64: 1, 128>}, {pipeline_mode = #tpu.pipeline_mode<synchronous>, transform_indices = @transform_3, window_bounds = array<i64: 1, 128>}, {pipeline_mode = #tpu.pipeline_mode<synchronous>, transform_indices = @transform_4, window_bounds = array<i64: 1, 128>}, {pipeline_mode = #tpu.pipeline_mode<synchronous>, transform_indices = @transform_5, window_bounds = array<i64: 1, 128>}]} {
    %c0_i32 = arith.constant 0 : i32
    %0 = arith.cmpi eq, %arg0, %c0_i32 : i32
    %1 = arith.extui %0 : i1 to i32
    %c0_i32_0 = arith.constant 0 : i32
    %2 = arith.cmpi ne, %1, %c0_i32_0 : i32
    scf.if %2 {
      %cst_15 = arith.constant 0.000000e+00 : f32
      %20 = vector.broadcast %cst_15 : f32 to vector<1x128xf32>
      %c0_16 = arith.constant 0 : index
      %c0_17 = arith.constant 0 : index
      %21 = vector.load %arg7[%c0_16, %c0_17] : memref<1x128xf32, #tpu.memory_space<vmem>>, vector<1x128xf32>
      tpu.vector_store %arg7[%c0_16, %c0_17], %20 {strides = array<i32>} : memref<1x128xf32, #tpu.memory_space<vmem>>, vector<1x128xf32>,
      %cst_18 = arith.constant 0.000000e+00 : f32
      %22 = vector.broadcast %cst_18 : f32 to vector<1x128xf32>
      %c0_19 = arith.constant 0 : index
      %c0_20 = arith.constant 0 : index
      %23 = vector.load %arg8[%c0_19, %c0_20] : memref<1x128xf32, #tpu.memory_space<vmem>>, vector<1x128xf32>
      tpu.vector_store %arg8[%c0_19, %c0_20], %22 {strides = array<i32>} : memref<1x128xf32, #tpu.memory_space<vmem>>, vector<1x128xf32>,
    } else {
    }
    %c0 = arith.constant 0 : index
    %c0_1 = arith.constant 0 : index
    %3 = vector.load %arg1[%c0, %c0_1] : memref<128x128xbf16, #tpu.memory_space<vmem>>, vector<128x128xbf16>
    %c0_2 = arith.constant 0 : index
    %c0_3 = arith.constant 0 : index
    %4 = vector.load %arg2[%c0_2, %c0_3] : memref<128x128xbf16, #tpu.memory_space<vmem>>, vector<128x128xbf16>
    %cst = arith.constant dense<0.000000e+00> : vector<128x128xf32>
    %5 = tpu.matmul %3, %4, %cst {dimension_numbers = #tpu.dot_dimension_numbers<[1], [0], [0], [1], [0, 0, 1, 1], [], []>} : vector<128x128xbf16>, vector<128x128xbf16>, vector<128x128xf32> -> vector<128x128xf32>
    %c0_4 = arith.constant 0 : index
    %c0_5 = arith.constant 0 : index
    %6 = vector.load %arg7[%c0_4, %c0_5] : memref<1x128xf32, #tpu.memory_space<vmem>>, vector<1x128xf32>
    %cst_6 = arith.constant dense<0.000000e+00> : vector<128xf32>
    %7 = vector.multi_reduction <add>, %5, %cst_6 [0] : vector<128x128xf32> to vector<128xf32>
    %8 = vector.shape_cast %7 : vector<128xf32> to vector<1x128xf32>
    %9 = arith.addf %6, %8 : vector<1x128xf32>
    %c0_7 = arith.constant 0 : index
    %c0_8 = arith.constant 0 : index
    %10 = vector.load %arg7[%c0_7, %c0_8] : memref<1x128xf32, #tpu.memory_space<vmem>>, vector<1x128xf32>
    tpu.vector_store %arg7[%c0_7, %c0_8], %9 {strides = array<i32>} : memref<1x128xf32, #tpu.memory_space<vmem>>, vector<1x128xf32>,
    %c0_9 = arith.constant 0 : index
    %c0_10 = arith.constant 0 : index
    %11 = vector.load %arg8[%c0_9, %c0_10] : memref<1x128xf32, #tpu.memory_space<vmem>>, vector<1x128xf32>
    %12 = arith.mulf %5, %5 : vector<128x128xf32>
    %cst_11 = arith.constant dense<0.000000e+00> : vector<128xf32>
    %13 = vector.multi_reduction <add>, %12, %cst_11 [0] : vector<128x128xf32> to vector<128xf32>
    %14 = vector.shape_cast %13 : vector<128xf32> to vector<1x128xf32>
    %15 = arith.addf %11, %14 : vector<1x128xf32>
    %c0_12 = arith.constant 0 : index
    %c0_13 = arith.constant 0 : index
    %16 = vector.load %arg8[%c0_12, %c0_13] : memref<1x128xf32, #tpu.memory_space<vmem>>, vector<1x128xf32>
    tpu.vector_store %arg8[%c0_12, %c0_13], %15 {strides = array<i32>} : memref<1x128xf32, #tpu.memory_space<vmem>>, vector<1x128xf32>,
    %c3_i32 = arith.constant 3 : i32
    %17 = arith.cmpi eq, %arg0, %c3_i32 : i32
    %18 = arith.extui %17 : i1 to i32
    %c0_i32_14 = arith.constant 0 : i32
    %19 = arith.cmpi ne, %18, %c0_i32_14 : i32
    scf.if %19 {
      %c0_15 = arith.constant 0 : index
      %c0_16 = arith.constant 0 : index
      %20 = vector.load %arg7[%c0_15, %c0_16] : memref<1x128xf32, #tpu.memory_space<vmem>>, vector<1x128xf32>
      %cst_17 = arith.constant 0.001953125 : f32
      %21 = vector.broadcast %cst_17 : f32 to vector<1x128xf32>
      %22 = arith.mulf %20, %21 : vector<1x128xf32>
      %c0_18 = arith.constant 0 : index
      %c0_19 = arith.constant 0 : index
      %23 = vector.load %arg8[%c0_18, %c0_19] : memref<1x128xf32, #tpu.memory_space<vmem>>, vector<1x128xf32>
      %cst_20 = arith.constant 0.001953125 : f32
      %24 = vector.broadcast %cst_20 : f32 to vector<1x128xf32>
      %25 = arith.mulf %23, %24 : vector<1x128xf32>
      %26 = arith.mulf %22, %22 : vector<1x128xf32>
      %27 = arith.subf %25, %26 : vector<1x128xf32>
      %cst_21 = arith.constant 0.000000e+00 : f32
      %28 = vector.broadcast %cst_21 : f32 to vector<1x128xf32>
      %29 = arith.maximumf %27, %28 : vector<1x128xf32>
      %c0_22 = arith.constant 0 : index
      %c0_23 = arith.constant 0 : index
      %30 = vector.load %arg3[%c0_22, %c0_23] : memref<1x128xf32, #tpu.memory_space<vmem>>, vector<1x128xf32>
      %cst_24 = arith.constant 9.99999974E-6 : f32
      %31 = vector.broadcast %cst_24 : f32 to vector<1x128xf32>
      %32 = arith.addf %29, %31 : vector<1x128xf32>
      %33 = math.rsqrt %32 : vector<1x128xf32>
      %34 = arith.mulf %30, %33 : vector<1x128xf32>
      %c0_25 = arith.constant 0 : index
      %c0_26 = arith.constant 0 : index
      %35 = vector.load %arg5[%c0_25, %c0_26] : memref<1x128xf32, #tpu.memory_space<vmem>>, vector<1x128xf32>
      tpu.vector_store %arg5[%c0_25, %c0_26], %34 {strides = array<i32>} : memref<1x128xf32, #tpu.memory_space<vmem>>, vector<1x128xf32>,
      %c0_27 = arith.constant 0 : index
      %c0_28 = arith.constant 0 : index
      %36 = vector.load %arg4[%c0_27, %c0_28] : memref<1x128xf32, #tpu.memory_space<vmem>>, vector<1x128xf32>
      %37 = arith.mulf %22, %34 : vector<1x128xf32>
      %38 = arith.subf %36, %37 : vector<1x128xf32>
      %c0_29 = arith.constant 0 : index
      %c0_30 = arith.constant 0 : index
      %39 = vector.load %arg6[%c0_29, %c0_30] : memref<1x128xf32, #tpu.memory_space<vmem>>, vector<1x128xf32>
      tpu.vector_store %arg6[%c0_29, %c0_30], %38 {strides = array<i32>} : memref<1x128xf32, #tpu.memory_space<vmem>>, vector<1x128xf32>,
    } else {
    }
    return
  }
  func.func @transform_0(%arg0: i32) -> (i32, i32) {
    %c0_i32 = arith.constant 0 : i32
    %c0_i32_0 = arith.constant 0 : i32
    return %arg0, %c0_i32 : i32, i32
  }
  func.func @transform_1(%arg0: i32) -> (i32, i32) {
    %c0_i32 = arith.constant 0 : i32
    %c0_i32_0 = arith.constant 0 : i32
    %c0_i32_1 = arith.constant 0 : i32
    return %c0_i32, %c0_i32_0 : i32, i32
  }
  func.func @transform_2(%arg0: i32) -> (i32, i32) {
    %c0_i32 = arith.constant 0 : i32
    %c0_i32_0 = arith.constant 0 : i32
    %c0_i32_1 = arith.constant 0 : i32
    return %c0_i32, %c0_i32_0 : i32, i32
  }
  func.func @transform_3(%arg0: i32) -> (i32, i32) {
    %c0_i32 = arith.constant 0 : i32
    %c0_i32_0 = arith.constant 0 : i32
    %c0_i32_1 = arith.constant 0 : i32
    return %c0_i32, %c0_i32_0 : i32, i32
  }
  func.func @transform_4(%arg0: i32) -> (i32, i32) {
    %c0_i32 = arith.constant 0 : i32
    %c0_i32_0 = arith.constant 0 : i32
    %c0_i32_1 = arith.constant 0 : i32
    return %c0_i32, %c0_i32_0 : i32, i32
  }
  func.func @transform_5(%arg0: i32) -> (i32, i32) {
    %c0_i32 = arith.constant 0 : i32
    %c0_i32_0 = arith.constant 0 : i32
    %c0_i32_1 = arith.constant 0 : i32
    return %c0_i32, %c0_i32_0 : i32, i32
  }
}

</mosaic_0001>

<bundles_post_ra>
// kernel: conv_block_forward.2
= control target key start
LH: loop header
LB: loop body
LE: loop exit
PB: predicated region body
PF: predicated region fallthrough
CT: control target
= control target key end

     0   :  { %s716_s18 = smov 0   ;;  %s781_s0 = inlined_call_operand.vmem [shape: bf16[512,128], index: 0, kind: input, shape index: {}]   ;;  %s782_s1 = inlined_call_operand.vmem [shape: bf16[128,128], index: 1, kind: input, shape index: {}]   ;;  %s783_s2 = inlined_call_operand.vmem [shape: f32[1,128], index: 2, kind: input, shape index: {}]   ;;  %s784_s3 = inlined_call_operand.vmem [shape: f32[1,128], index: 3, kind: input, shape index: {}]   ;;  %s785_s4 = inlined_call_operand.vmem [shape: f32[1,128], index: 4, kind: output, shape index: {0}]   ;;  %s786_s5 = inlined_call_operand.vmem [shape: f32[1,128], index: 5, kind: output, shape index: {1}]  }
   0x1 LB: > { %s722_s19 = sadd.s32 4294967295, %s683_s18   ;;  %p563_p0 = scmp.ge.s32.totalorder %s683_s18, 1  ;;  %s683_s18 = sphi %s716_s18, %s16_s18  }
   0x2   : > { %p181_p1 = scmp.lt.s32.totalorder %s683_s18, 5 }
   0x4   : > { %p182_p2 = pnand %p563_p0, %p181_p1 }
   0x5   : > { %s564_s20 = sshll.u32 (!%p182_p2), %s722_s19, 4  ;;  %p566_p4 = scmp.ne.s32.totalorder (!%p182_p2), %s722_s19, 0 }
   0x6   : > { %185 = sbr.rel (%p182_p2) target bundleno = 333 (0x14d), region = 36  ;;  %p205_p3 = scmp.lt.s32.totalorder (!%p182_p2), %s564_s20, 63 }
   0xb   : > { %s788_s20 = smov (!%p205_p3, %s564_s20), 63  ;;  %214 = sbr.rel (%p566_p4) target bundleno = 18 (0x12), region = 40 }
   0xc   : > { %s565_s21 = sshll.u32 %s788_s20, 2 }
   0xd   : > { %s730_s24 = scalar_lea.vmem %s781_s0, %s565_s21 }
  0x10   : > { %v685_v0 = vmov 0.0  }
  0x11   : > { %215 = vst [vmem:[#allocation2] sm:$0x1] %v685_v0  ;;  %216 = vst [vmem:[#allocation3] sm:$0x1] %v685_v0 }
  0x12 PF: > { %v659_v1 = vld [vmem:[%s782_s1 + $0x38] sm:$0xff]   ;;  %v660_v2 = vld [vmem:[%s782_s1 + $0x30] sm:$0xff]   ;;  %v661_v3 = vld [vmem:[%s782_s1 + $0x28] sm:$0xff]   ;;  %p583_p5 = scmp.ne.s32.totalorder %s722_s19, 3 }
  0x13   : > { %602 = vmatprep.subr.bf16.mxu0 %v659_v1  ;;  %634 = vmatprep.subr.bf16.mxu1 %v659_v1  ;;  %v662_v4 = vld [vmem:[%s782_s1 + $0x20] sm:$0xff]   ;;  %v663_v6 = vld [vmem:[%s782_s1 + $0x18] sm:$0xff]   ;;  %v664_v8 = vld [vmem:[%s782_s1 + $0x10] sm:$0xff]  }
  0x14   : > { %603 = vmatpush3.bf16.msra.mxu0 %v659_v1  ;;  %642 = vmatpush3.bf16.msra.mxu1 %v659_v1  ;;  %v667_v5 = vld [vmem:[%s730_s24] sm:$0xff]   ;;  %v665_v9 = vld [vmem:[%s782_s1 + $0x8] sm:$0xff]   ;;  %v669_v13 = vld [vmem:[%s730_s24 + $0x10] sm:$0xff]  }
  0x15   : > { %604 = vmatprep.subr.bf16.mxu0 %v660_v2  ;;  %635 = vmatprep.subr.bf16.mxu1 %v660_v2  ;;  %v671_v7 = vld [vmem:[%s730_s24 + $0x20] sm:$0xff]   ;;  %v668_v11 = vld [vmem:[%s730_s24 + $0x8] sm:$0xff]   ;;  %v673_v14 = vld [vmem:[%s730_s24 + $0x30] sm:$0xff]  }
  0x16   : > { %618 = vmatprep.mubr.bf16.mxu0 %v667_v5  ;;  %626 = vmatprep.mubr.bf16.mxu1 %v671_v7  ;;  %v666_v10 = vld [vmem:[%s782_s1] sm:$0xff]   ;;  %v672_v12 = vld [vmem:[%s730_s24 + $0x28] sm:$0xff]   ;;  %v670_v15 = vld [vmem:[%s730_s24 + $0x18] sm:$0xff]  }
  0x17   : > { %v674_v16 = vld [vmem:[%s730_s24 + $0x38] sm:$0xff]  }
  0x18   : > { %605 = vmatpush3.bf16.msra.mxu0 %v660_v2  ;;  %643 = vmatpush3.bf16.msra.mxu1 %v660_v2 }
  0x19   : > { %606 = vmatprep.subr.bf16.mxu0 %v661_v3  ;;  %636 = vmatprep.subr.bf16.mxu1 %v661_v3 }
  0x1c   : > { %607 = vmatpush3.bf16.msra.mxu0 %v661_v3  ;;  %644 = vmatpush3.bf16.msra.mxu1 %v661_v3 }
  0x1d   : > { %608 = vmatprep.subr.bf16.mxu0 %v662_v4  ;;  %637 = vmatprep.subr.bf16.mxu1 %v662_v4 }
  0x20   : > { %609 = vmatpush3.bf16.msra.mxu0 %v662_v4  ;;  %645 = vmatpush3.bf16.msra.mxu1 %v662_v4 }
  0x21   : > { %610 = vmatprep.subr.bf16.mxu0 %v663_v6  ;;  %638 = vmatprep.subr.bf16.mxu1 %v663_v6 }
  0x24   : > { %611 = vmatpush3.bf16.msra.mxu0 %v663_v6  ;;  %646 = vmatpush3.bf16.msra.mxu1 %v663_v6 }
  0x25   : > { %612 = vmatprep.subr.bf16.mxu0 %v664_v8  ;;  %639 = vmatprep.subr.bf16.mxu1 %v664_v8 }
  0x28   : > { %613 = vmatpush3.bf16.msra.mxu0 %v664_v8  ;;  %647 = vmatpush3.bf16.msra.mxu1 %v664_v8 }
  0x29   : > { %614 = vmatprep.subr.bf16.mxu0 %v665_v9  ;;  %640 = vmatprep.subr.bf16.mxu1 %v665_v9 }
  0x2c   : > { %615 = vmatpush3.bf16.msra.mxu0 %v665_v9  ;;  %648 = vmatpush3.bf16.msra.mxu1 %v665_v9 }
  0x2d   : > { %616 = vmatprep.subr.bf16.mxu0 %v666_v10  ;;  %641 = vmatprep.subr.bf16.mxu1 %v666_v10 }
  0x30   : > { %617 = vmatpush3.bf16.msra.mxu0 %v666_v10  ;;  %649 = vmatpush3.bf16.msra.mxu1 %v666_v10 }
  0x33   : > { %619 = vmatmul.mubr.bf16.vlgmr.msra.gmra.mxu0 %v668_v11  ;;  %627 = vmatmul.mubr.bf16.vlgmr.msra.gmra.mxu1 %v672_v12 }
  0x34   : > { %622 = vmatprep.mubr.bf16.mxu0 %v669_v13  ;;  %630 = vmatprep.mubr.bf16.mxu1 %v673_v14 }
  0x3b   : > { %623 = vmatmul.mubr.bf16.gmra.mxu0 %v670_v15  ;;  %631 = vmatmul.mubr.bf16.gmra.mxu1 %v674_v16 }
  0xf3   : > { %v620_v17 = vpop.f32.mrf.mxu0  ;;  %v628_v18 = vpop.f32.mrf.mxu1 }
  0xf4   : > { %v469_v28 = vmul.f32 %v620_v17, %v620_v17  ;;  %v477_v59 = vmul.f32 %v628_v18, %v628_v18 }
  0xf5   : > { %v379_v19 = vpop.f32.mrf.mxu0  ;;  %v411_v21 = vpop.f32.mrf.mxu1 }
  0xf6   : > { %v467_v23 = vmul.f32 %v379_v19, %v379_v19  ;;  %v475_v52 = vmul.f32 %v411_v21, %v411_v21 }
  0xf7   : > { %v621_v20 = vpop.f32.mrf.mxu0  ;;  %v629_v27 = vpop.f32.mrf.mxu1 }
  0xf8   : > { %v470_v32 = vmul.f32 %v621_v20, %v621_v20  ;;  %v478_v62 = vmul.f32 %v629_v27, %v629_v27 }
  0xf9   : > { %v382_v22 = vpop.f32.mrf.mxu0  ;;  %v414_v36 = vpop.f32.mrf.mxu1 }
  0xfa   : > { %v443_v24 = vadd.f32 %v382_v22, %v379_v19  ;;  %v468_v25 = vmul.f32 %v382_v22, %v382_v22  ;;  %v476_v56 = vmul.f32 %v414_v36, %v414_v36 }
  0xfb   : > { %v624_v26 = vpop.f32.mrf.mxu0  ;;  %v632_v44 = vpop.f32.mrf.mxu1 }
  0xfc   : > { %v444_v29 = vadd.f32 %v620_v17, %v443_v24  ;;  %v483_v30 = vadd.f32 %v468_v25, %v467_v23  ;;  %v473_v45 = vmul.f32 %v624_v26, %v624_v26  ;;  %v481_v8 = vmul.f32 %v632_v44, %v632_v44  ;;  %v442_v24 = vld [vmem:[#allocation2] sm:$0x1] }
  0xfd   : > { %v395_v31 = vpop.f32.mrf.mxu0  ;;  %v427_v51 = vpop.f32.mrf.mxu1 }
  0xfe   : > { %v484_v33 = vadd.f32 %v483_v30, %v469_v28  ;;  %v445_v34 = vadd.f32 %v621_v20, %v444_v29  ;;  %v471_v38 = vmul.f32 %v395_v31, %v395_v31  ;;  %v479_v3 = vmul.f32 %v427_v51, %v427_v51 }
  0xff   : > { %v625_v35 = vpop.f32.mrf.mxu0  ;;  %v633_v58 = vpop.f32.mrf.mxu1 }
 0x100   : > { %v446_v37 = vadd.f32 %v445_v34, %v395_v31  ;;  %v485_v39 = vadd.f32 %v484_v33, %v470_v32  ;;  %v474_v48 = vmul.f32 %v625_v35, %v625_v35  ;;  %v482_v11 = vmul.f32 %v633_v58, %v633_v58 }
 0x101   : > { %v398_v40 = vpop.f32.mrf.mxu0  ;;  %v430_v1 = vpop.f32.mrf.mxu1 }
 0x102   : > { %v486_v41 = vadd.f32 %v485_v39, %v471_v38  ;;  %v447_v42 = vadd.f32 %v446_v37, %v398_v40  ;;  %v472_v43 = vmul.f32 %v398_v40, %v398_v40  ;;  %v480_v7 = vmul.f32 %v430_v1, %v430_v1 }
 0x104   : > { %v448_v46 = vadd.f32 %v624_v26, %v447_v42  ;;  %v487_v47 = vadd.f32 %v486_v41, %v472_v43 }
 0x106   : > { %v449_v49 = vadd.f32 %v625_v35, %v448_v46  ;;  %v488_v50 = vadd.f32 %v487_v47, %v473_v45 }
 0x108   : > { %v489_v53 = vadd.f32 %v488_v50, %v474_v48  ;;  %v450_v54 = vadd.f32 %v449_v49, %v411_v21 }
 0x10a   : > { %v451_v55 = vadd.f32 %v450_v54, %v414_v36  ;;  %v490_v57 = vadd.f32 %v489_v53, %v475_v52 }
 0x10c   : > { %v452_v60 = vadd.f32 %v628_v18, %v451_v55  ;;  %v491_v61 = vadd.f32 %v490_v57, %v476_v56 }
 0x10e   : > { %v492_v63 = vadd.f32 %v491_v61, %v477_v59  ;;  %v453_v0 = vadd.f32 %v629_v27, %v452_v60  ;;  %v466_v27 = vld [vmem:[#allocation3] sm:$0x1] }
 0x110   : > { %v454_v2 = vadd.f32 %v453_v0, %v427_v51  ;;  %v493_v4 = vadd.f32 %v492_v63, %v478_v62 }
 0x112   : > { %v494_v5 = vadd.f32 %v493_v4, %v479_v3  ;;  %v455_v6 = vadd.f32 %v454_v2, %v430_v1 }
 0x114   : > { %v456_v9 = vadd.f32 %v632_v44, %v455_v6  ;;  %v495_v10 = vadd.f32 %v494_v5, %v480_v7 }
 0x116   : > { %v457_v12 = vadd.f32 %v633_v58, %v456_v9  ;;  %v496_v13 = vadd.f32 %v495_v10, %v481_v8 }
 0x118   : > { %v458_v14 = vrot.slane %v457_v12, 4  ;;  %v497_v15 = vadd.f32 %v496_v13, %v482_v11 }
 0x11a   : > { %v459_v16 = vadd.f32 %v458_v14, %v457_v12  ;;  %v498_v17 = vrot.slane %v497_v15, 4 }
 0x11c   : > { %v460_v18 = vrot.slane %v459_v16, 2  ;;  %v499_v19 = vadd.f32 %v498_v17, %v497_v15 }
 0x11e   : > { %v461_v20 = vadd.f32 %v460_v18, %v459_v16  ;;  %v500_v21 = vrot.slane %v499_v19, 2 }
 0x120   : > { %v462_v22 = vrot.slane %v461_v20, 1  ;;  %v501_v23 = vadd.f32 %v500_v21, %v499_v19 }
 0x122   : > { %v463_v25 = vadd.f32 %v462_v22, %v461_v20  ;;  %v502_v26 = vrot.slane %v501_v23, 1 }
 0x124   : > { %v464_v28 = vadd.f32 %v463_v25, %v442_v24  ;;  %v503_v29 = vadd.f32 %v502_v26, %v501_v23  ;;  %509 = sbr.rel (%p583_p5) target bundleno = 333 (0x14d), region = 44 }
 0x126   : > { %465 = vst [vmem:[#allocation2] sm:$0x1] %v464_v28  ;;  %v504_v30 = vadd.f32 %v503_v29, %v466_v27 }
 0x128   : > { %505 = vst [vmem:[#allocation3] sm:$0x1] %v504_v30 }
 0x129   : > { %v517_v39 = vld [vmem:[%s783_s2] sm:$0x1] }
 0x12a   : > { %v522_v42 = vld [vmem:[%s784_s3] sm:$0x1] }
 0x12d   : > { %v510_v31 = vld [vmem:[#allocation2] sm:$0x1] }
 0x12e   : > { %v511_v33 = vmul.f32 0.001953125, %v510_v31 }
 0x12f   : > { %v512_v32 = vld [vmem:[#allocation3] sm:$0x1] }
 0x130   : > { %v513_v34 = vmul.f32 0.001953125, %v512_v32  ;;  %v514_v35 = vmul.f32 %v511_v33, %v511_v33 }
 0x132   : > { %v515_v36 = vsub.f32 %v513_v34, %v514_v35 }
 0x134   : > { %v516_v37 = vmax.f32 %v515_v36, 0.0 }
 0x136   : > { %v518_v38 = vadd.f32 1e-05, %v516_v37 }
 0x138   : > { %675 = vrsqrt.f32 %v518_v38 }
 0x145   : > { %v676_v40 = vpop.eup %675 }
 0x146   : > { %v520_v41 = vmul.f32 %v676_v40, %v517_v39 }
 0x148   : > { %521 = vst [vmem:[%s785_s4] sm:$0x1] %v520_v41  ;;  %v523_v43 = vmul.f32 %v520_v41, %v511_v33 }
 0x14a   : > { %v524_v44 = vsub.f32 %v522_v42, %v523_v43 }
 0x14c   : > { %525 = vst [vmem:[%s786_s5] sm:$0x1] %v524_v44 }
 0x14d PF: > { %s16_s18 = sadd.s32 1, %s683_s18  }
 0x14e   : > { %p13_p6 = scmp.ge.s32.totalorder %s16_s18, 6  }
 0x150   :  { %15 = sbr.rel (!%p13_p6) target bundleno = 1 (0x1), region = 78 }

// kernel: conv_block_forward.3
= control target key start
LH: loop header
LB: loop body
LE: loop exit
PB: predicated region body
PF: predicated region fallthrough
CT: control target
= control target key end

     0   :  { %s711_s15 = smov 0   ;;  %s826_s0 = inlined_call_operand.vmem [shape: bf16[512,128], index: 0, kind: input, shape index: {}]   ;;  %s827_s1 = inlined_call_operand.vmem [shape: bf16[128,128], index: 1, kind: input, shape index: {}]   ;;  %s828_s2 = inlined_call_operand.vmem [shape: f32[1,128], index: 2, kind: input, shape index: {}]   ;;  %s829_s3 = inlined_call_operand.vmem [shape: f32[1,128], index: 3, kind: input, shape index: {}]   ;;  %s830_s4 = inlined_call_operand.vmem [shape: f32[512,128], index: 4, kind: output, shape index: {}]  }
   0x1 LB: > { %s561_s16 = sadd.s32 4294967295, %s684_s15   ;;  %p565_p0 = scmp.ge.s32.totalorder %s684_s15, 1  ;;  %s684_s15 = sphi %s711_s15, %s14_s15  }
   0x2   : > { %p163_p1 = scmp.lt.s32.totalorder %s684_s15, 5 }
   0x4   : > { %p164_p2 = pnand %p565_p0, %p163_p1 }
   0x5   : > { %s566_s19 = sshll.u32 (!%p164_p2), %s561_s16, 4 }
   0x6   : > { %167 = sbr.rel (%p164_p2) target bundleno = 258 (0x102), region = 36  ;;  %p190_p3 = scmp.lt.s32.totalorder (!%p164_p2), %s566_s19, 63 }
   0xb   : > { %v662_v0 = vld [vmem:[%s827_s1 + $0x38] sm:$0xff]   ;;  %v663_v1 = vld [vmem:[%s827_s1 + $0x30] sm:$0xff]   ;;  %s832_s19 = smov (!%p190_p3, %s566_s19), 63  ;;  %v664_v2 = vld [vmem:[%s827_s1 + $0x28] sm:$0xff]  }
   0xc   : > { %606 = vmatprep.subr.bf16.mxu0 %v662_v0  ;;  %638 = vmatprep.subr.bf16.mxu1 %v662_v0  ;;  %s567_s24 = sshll.u32 %s832_s19, 2  ;;  %v665_v3 = vld [vmem:[%s827_s1 + $0x20] sm:$0xff]   ;;  %v666_v6 = vld [vmem:[%s827_s1 + $0x18] sm:$0xff]   ;;  %v667_v7 = vld [vmem:[%s827_s1 + $0x10] sm:$0xff]   ;;  %s569_s17 = sshll.u32 %s832_s19, 3 }
   0xd   : > { %607 = vmatpush3.bf16.msra.mxu0 %v662_v0  ;;  %646 = vmatpush3.bf16.msra.mxu1 %v662_v0  ;;  %s734_s27 = scalar_lea.vmem %s826_s0, %s567_s24  ;;  %v668_v8 = vld [vmem:[%s827_s1 + $0x8] sm:$0xff]   ;;  %v669_v9 = vld [vmem:[%s827_s1] sm:$0xff]   ;;  %s779_s21 = scalar_lea.vmem %s830_s4, %s569_s17 }
   0xe   : > { %608 = vmatprep.subr.bf16.mxu0 %v663_v1  ;;  %639 = vmatprep.subr.bf16.mxu1 %v663_v1  ;;  %v670_v4 = vld [vmem:[%s734_s27] sm:$0xff]   ;;  %v672_v10 = vld [vmem:[%s734_s27 + $0x8] sm:$0xff]   ;;  %v674_v12 = vld [vmem:[%s734_s27 + $0x10] sm:$0xff]  }
   0xf   : > { %v671_v5 = vld [vmem:[%s734_s27 + $0x20] sm:$0xff]   ;;  %622 = vmatprep.mubr.bf16.mxu0 %v670_v4  ;;  %v673_v11 = vld [vmem:[%s734_s27 + $0x28] sm:$0xff]   ;;  %v675_v13 = vld [vmem:[%s734_s27 + $0x30] sm:$0xff]  }
  0x10   : > { %630 = vmatprep.mubr.bf16.mxu1 %v671_v5  ;;  %v676_v14 = vld [vmem:[%s734_s27 + $0x18] sm:$0xff]   ;;  %v762_v16 = vld [vmem:[%s828_s2] ss:$0 sm:$0xff] }
  0x11   : > { %609 = vmatpush3.bf16.msra.mxu0 %v663_v1  ;;  %647 = vmatpush3.bf16.msra.mxu1 %v663_v1  ;;  %v677_v15 = vld [vmem:[%s734_s27 + $0x38] sm:$0xff]   ;;  %v767_v18 = vld [vmem:[%s829_s3] ss:$0 sm:$0xff] }
  0x12   : > { %610 = vmatprep.subr.bf16.mxu0 %v664_v2  ;;  %640 = vmatprep.subr.bf16.mxu1 %v664_v2 }
  0x15   : > { %611 = vmatpush3.bf16.msra.mxu0 %v664_v2  ;;  %648 = vmatpush3.bf16.msra.mxu1 %v664_v2 }
  0x16   : > { %612 = vmatprep.subr.bf16.mxu0 %v665_v3  ;;  %641 = vmatprep.subr.bf16.mxu1 %v665_v3 }
  0x19   : > { %613 = vmatpush3.bf16.msra.mxu0 %v665_v3  ;;  %649 = vmatpush3.bf16.msra.mxu1 %v665_v3 }
  0x1a   : > { %614 = vmatprep.subr.bf16.mxu0 %v666_v6  ;;  %642 = vmatprep.subr.bf16.mxu1 %v666_v6 }
  0x1d   : > { %615 = vmatpush3.bf16.msra.mxu0 %v666_v6  ;;  %650 = vmatpush3.bf16.msra.mxu1 %v666_v6 }
  0x1e   : > { %616 = vmatprep.subr.bf16.mxu0 %v667_v7  ;;  %643 = vmatprep.subr.bf16.mxu1 %v667_v7 }
  0x21   : > { %617 = vmatpush3.bf16.msra.mxu0 %v667_v7  ;;  %651 = vmatpush3.bf16.msra.mxu1 %v667_v7 }
  0x22   : > { %618 = vmatprep.subr.bf16.mxu0 %v668_v8  ;;  %644 = vmatprep.subr.bf16.mxu1 %v668_v8 }
  0x25   : > { %619 = vmatpush3.bf16.msra.mxu0 %v668_v8  ;;  %652 = vmatpush3.bf16.msra.mxu1 %v668_v8 }
  0x26   : > { %620 = vmatprep.subr.bf16.mxu0 %v669_v9  ;;  %645 = vmatprep.subr.bf16.mxu1 %v669_v9 }
  0x29   : > { %621 = vmatpush3.bf16.msra.mxu0 %v669_v9  ;;  %653 = vmatpush3.bf16.msra.mxu1 %v669_v9 }
  0x2c   : > { %623 = vmatmul.mubr.bf16.vlgmr.msra.gmra.mxu0 %v672_v10  ;;  %631 = vmatmul.mubr.bf16.vlgmr.msra.gmra.mxu1 %v673_v11 }
  0x2d   : > { %626 = vmatprep.mubr.bf16.mxu0 %v674_v12  ;;  %634 = vmatprep.mubr.bf16.mxu1 %v675_v13 }
  0x34   : > { %627 = vmatmul.mubr.bf16.gmra.mxu0 %v676_v14  ;;  %635 = vmatmul.mubr.bf16.gmra.mxu1 %v677_v15 }
  0xec   : > { %v624_v17 = vpop.f32.mrf.mxu0  ;;  %v632_v19 = vpop.f32.mrf.mxu1 }
  0xed   : > { %v436_v20 = vmul.f32 %v624_v17, %v762_v16  ;;  %v444_v21 = vmul.f32 %v632_v19, %v762_v16 }
  0xee   : > { %v364_v22 = vpop.f32.mrf.mxu0  ;;  %v396_v23 = vpop.f32.mrf.mxu1 }
  0xef   : > { %v459_v24 = vadd.f32 %v767_v18, %v436_v20  ;;  %v467_v25 = vadd.f32 %v767_v18, %v444_v21  ;;  %v434_v26 = vmul.f32 %v762_v16, %v364_v22  ;;  %v442_v27 = vmul.f32 %v762_v16, %v396_v23 }
  0xf0   : > { %v625_v28 = vpop.f32.mrf.mxu0  ;;  %v633_v29 = vpop.f32.mrf.mxu1 }
  0xf1   : > { %v475_v30 = vmax.f32 %v459_v24, 0.0  ;;  %v483_v31 = vmax.f32 %v467_v25, 0.0  ;;  %v457_v32 = vadd.f32 %v767_v18, %v434_v26  ;;  %v465_v33 = vadd.f32 %v767_v18, %v442_v27 }
  0xf2   : > { %v437_v34 = vmul.f32 %v625_v28, %v762_v16  ;;  %v445_v35 = vmul.f32 %v633_v29, %v762_v16  ;;  %v367_v36 = vpop.f32.mrf.mxu0  ;;  %v399_v37 = vpop.f32.mrf.mxu1 }
  0xf3   : > { %491 = vst [vmem:[%s779_s21 + $0x10] sm:$0xff] %v475_v30  ;;  %499 = vst [vmem:[%s779_s21 + $0x50] sm:$0xff] %v483_v31  ;;  %v473_v38 = vmax.f32 %v457_v32, 0.0  ;;  %v481_v39 = vmax.f32 %v465_v33, 0.0  ;;  %v435_v40 = vmul.f32 %v762_v16, %v367_v36  ;;  %v443_v41 = vmul.f32 %v762_v16, %v399_v37 }
  0xf4   : > { %v460_v42 = vadd.f32 %v767_v18, %v437_v34  ;;  %v468_v43 = vadd.f32 %v767_v18, %v445_v35  ;;  %v628_v44 = vpop.f32.mrf.mxu0  ;;  %v636_v45 = vpop.f32.mrf.mxu1 }
  0xf5   : > { %489 = vst [vmem:[%s779_s21] sm:$0xff] %v473_v38  ;;  %497 = vst [vmem:[%s779_s21 + $0x40] sm:$0xff] %v481_v39  ;;  %v458_v46 = vadd.f32 %v767_v18, %v435_v40  ;;  %v466_v47 = vadd.f32 %v767_v18, %v443_v41  ;;  %v440_v48 = vmul.f32 %v628_v44, %v762_v16 }
  0xf6   : > { %v448_v49 = vmul.f32 %v636_v45, %v762_v16  ;;  %v476_v50 = vmax.f32 %v460_v42, 0.0  ;;  %v484_v51 = vmax.f32 %v468_v43, 0.0  ;;  %v380_v52 = vpop.f32.mrf.mxu0  ;;  %v412_v53 = vpop.f32.mrf.mxu1 }
  0xf7   : > { %v474_v54 = vmax.f32 %v458_v46, 0.0  ;;  %v482_v55 = vmax.f32 %v466_v47, 0.0  ;;  %v463_v56 = vadd.f32 %v767_v18, %v440_v48  ;;  %v438_v58 = vmul.f32 %v762_v16, %v380_v52 }
  0xf8   : > { %v471_v57 = vadd.f32 %v767_v18, %v448_v49  ;;  %492 = vst [vmem:[%s779_s21 + $0x18] sm:$0xff] %v476_v50  ;;  %500 = vst [vmem:[%s779_s21 + $0x58] sm:$0xff] %v484_v51  ;;  %v446_v59 = vmul.f32 %v762_v16, %v412_v53  ;;  %v629_v60 = vpop.f32.mrf.mxu0  ;;  %v637_v61 = vpop.f32.mrf.mxu1 }
  0xf9   : > { %490 = vst [vmem:[%s779_s21 + $0x8] sm:$0xff] %v474_v54  ;;  %498 = vst [vmem:[%s779_s21 + $0x48] sm:$0xff] %v482_v55  ;;  %v479_v62 = vmax.f32 %v463_v56, 0.0  ;;  %v441_v0 = vmul.f32 %v629_v60, %v762_v16  ;;  %v449_v1 = vmul.f32 %v637_v61, %v762_v16  ;;  %v461_v2 = vadd.f32 %v767_v18, %v438_v58 }
  0xfa   : > { %v487_v63 = vmax.f32 %v471_v57, 0.0  ;;  %v469_v3 = vadd.f32 %v767_v18, %v446_v59  ;;  %v383_v4 = vpop.f32.mrf.mxu0  ;;  %v415_v5 = vpop.f32.mrf.mxu1 }
  0xfb   : > { %495 = vst [vmem:[%s779_s21 + $0x30] sm:$0xff] %v479_v62  ;;  %v464_v6 = vadd.f32 %v767_v18, %v441_v0  ;;  %v472_v7 = vadd.f32 %v767_v18, %v449_v1  ;;  %v439_v8 = vmul.f32 %v762_v16, %v383_v4  ;;  %v447_v9 = vmul.f32 %v762_v16, %v415_v5 }
  0xfc   : > { %503 = vst [vmem:[%s779_s21 + $0x70] sm:$0xff] %v487_v63  ;;  %v477_v10 = vmax.f32 %v461_v2, 0.0  ;;  %v485_v11 = vmax.f32 %v469_v3, 0.0 }
  0xfd   : > { %v480_v12 = vmax.f32 %v464_v6, 0.0  ;;  %v488_v13 = vmax.f32 %v472_v7, 0.0  ;;  %v462_v14 = vadd.f32 %v767_v18, %v439_v8  ;;  %v470_v15 = vadd.f32 %v767_v18, %v447_v9 }
  0xfe   : > { %493 = vst [vmem:[%s779_s21 + $0x20] sm:$0xff] %v477_v10  ;;  %501 = vst [vmem:[%s779_s21 + $0x60] sm:$0xff] %v485_v11 }
  0xff   : > { %496 = vst [vmem:[%s779_s21 + $0x38] sm:$0xff] %v480_v12  ;;  %504 = vst [vmem:[%s779_s21 + $0x78] sm:$0xff] %v488_v13  ;;  %v478_v17 = vmax.f32 %v462_v14, 0.0  ;;  %v486_v19 = vmax.f32 %v470_v15, 0.0 }
 0x101   : > { %494 = vst [vmem:[%s779_s21 + $0x28] sm:$0xff] %v478_v17  ;;  %502 = vst [vmem:[%s779_s21 + $0x68] sm:$0xff] %v486_v19 }
 0x102 PF: > { %s14_s15 = sadd.s32 1, %s684_s15  }
 0x103   : > { %p11_p4 = scmp.ge.s32.totalorder %s14_s15, 6  }
 0x105   :  { %13 = sbr.rel (!%p11_p4) target bundleno = 1 (0x1), region = 66 }

</bundles_post_ra>
